<compile_context>
chip_gen: v5e
topology: v5e:2x2
jax: 0.10.0
libtpu: 0.0.40
codegen_flags: <defaults>
</compile_context>

<pallas_src>
import functools

import jax
import jax.numpy as jnp
from jax.experimental import pallas as pl
from jax.experimental.pallas import tpu as pltpu

EPS = 1e-5
NEG_SLOPE = 0.01

# Row layout of the packed per-feature parameter array (16, dout_pad), f32.
ROW_G1, ROW_BE1 = 0, 1
ROW_G2, ROW_BE2 = 2, 3
ROW_G3, ROW_BE3 = 4, 5
ROW_GS, ROW_BES = 6, 7
ROW_B4 = 8
N_PARAM_ROWS = 16


def _round_up(x, m):
    return (x + m - 1) // m * m


def _leaky_relu(x):
    return jnp.where(x >= 0, x, NEG_SLOPE * x)


def _make_kernel(n_true, n_pad):
    """Build the fused kernel; n_true/n_pad are static Python ints."""
    need_mask = n_pad != n_true
    inv_n = 1.0 / float(n_true)

    def kernel(x_ref, w1_ref, w2_ref, w3_ref, w4_ref, ws_ref, pv_ref, o_ref):
        x = x_ref[...]  # bf16 (n_pad, din_pad)

        if need_mask:
            row_mask = (
                jax.lax.broadcasted_iota(jnp.int32, (n_pad, 1), 0) < n_true
            )
        else:
            row_mask = None

        def bn(z, gamma_row, beta_row, apply_lrelu):
            # One-pass batch statistics (biased variance), folded scale/shift.
            mean = jnp.sum(z, axis=0, keepdims=True) * inv_n
            ex2 = jnp.sum(z * z, axis=0, keepdims=True) * inv_n
            var = jnp.maximum(ex2 - mean * mean, 0.0)
            scale = pv_ref[gamma_row:gamma_row + 1, :] * jax.lax.rsqrt(var + EPS)
            shift = pv_ref[beta_row:beta_row + 1, :] - mean * scale
            y = z * scale + shift
            if apply_lrelu:
                y = _leaky_relu(y)
            if row_mask is not None:
                # Keep padded batch rows exactly zero so downstream statistics
                # (divided by the true batch size) stay exact.
                y = jnp.where(row_mask, y, 0.0)
            return y

        # --- layer 1: h1 -> bn1 -> leaky_relu (pre-BN bias cancelled by BN) ---
        z = jnp.dot(x, w1_ref[...], preferred_element_type=jnp.float32)
        h = bn(z, ROW_G1, ROW_BE1, apply_lrelu=True)

        # --- layer 2 ---
        z = jnp.dot(h.astype(jnp.bfloat16), w2_ref[...],
                    preferred_element_type=jnp.float32)
        h = bn(z, ROW_G2, ROW_BE2, apply_lrelu=True)

        # --- layer 3 ---
        z = jnp.dot(h.astype(jnp.bfloat16), w3_ref[...],
                    preferred_element_type=jnp.float32)
        h = bn(z, ROW_G3, ROW_BE3, apply_lrelu=True)

        # --- skip path: skip -> bn_skip (no activation) ---
        zs = jnp.dot(x, ws_ref[...], preferred_element_type=jnp.float32)
        r = bn(zs, ROW_GS, ROW_BES, apply_lrelu=False)

        # --- layer 4: h4 + residual -> leaky_relu (bias b4 kept, not cancelled) ---
        z4 = jnp.dot(h.astype(jnp.bfloat16), w4_ref[...],
                     preferred_element_type=jnp.float32)
        out = z4 + pv_ref[ROW_B4:ROW_B4 + 1, :] + r
        o_ref[...] = _leaky_relu(out).astype(o_ref.dtype)

    return kernel


def _vmem_budget_bytes(n_pad, din_pad, dout_pad):
    bf16, f32 = 2, 4
    w_bytes = bf16 * (2 * din_pad * dout_pad + 3 * dout_pad * dout_pad)
    x_bytes = bf16 * n_pad * din_pad
    o_bytes = f32 * n_pad * dout_pad
    pv_bytes = f32 * N_PARAM_ROWS * dout_pad
    act_bytes = f32 * n_pad * dout_pad
    # inputs/outputs (double-buffered by the runtime) + generous headroom for
    # in-flight intermediates + 4 MiB slack.
    total = 2 * (w_bytes + x_bytes + o_bytes + pv_bytes) + 8 * act_bytes + (4 << 20)
    return int(min(max(total, 8 << 20), 60 << 20))


def block_full_resnet(x, params):
    """x: (N, dim_in) float32.  params: dict of weights (see init_params)."""
    n, dim_in = x.shape
    dim_out = params["w1"].shape[0]

    n_pad = _round_up(max(n, 8), 8)
    din_pad = _round_up(dim_in, 128)
    dout_pad = _round_up(dim_out, 128)

    # Input: pad to (n_pad, din_pad), bf16 MXU operand.
    x_p = jnp.pad(
        x.astype(jnp.float32), ((0, n_pad - n), (0, din_pad - dim_in))
    ).astype(jnp.bfloat16)

    # Weights: (out,in) -> (in,out), zero-pad to 128-multiples, bf16.
    def w_pad(w, in_pad, out_pad):
        wt = w.astype(jnp.float32).T
        wt = jnp.pad(wt, ((0, in_pad - wt.shape[0]), (0, out_pad - wt.shape[1])))
        return wt.astype(jnp.bfloat16)

    w1 = w_pad(params["w1"], din_pad, dout_pad)
    w2 = w_pad(params["w2"], dout_pad, dout_pad)
    w3 = w_pad(params["w3"], dout_pad, dout_pad)
    w4 = w_pad(params["w4"], dout_pad, dout_pad)
    ws = w_pad(params["ws"], din_pad, dout_pad)

    # Pack the nine surviving per-feature vectors into one (16, dout_pad) f32
    # array (b1/b2/b3/bs are dropped: exactly cancelled by training-mode BN).
    def row(v):
        return jnp.pad(v.astype(jnp.float32), (0, dout_pad - v.shape[0]))

    rows = [
        row(params["g1"]), row(params["be1"]),
        row(params["g2"]), row(params["be2"]),
        row(params["g3"]), row(params["be3"]),
        row(params["gs"]), row(params["bes"]),
        row(params["b4"]),
    ]
    while len(rows) < N_PARAM_ROWS:
        rows.append(jnp.zeros((dout_pad,), jnp.float32))
    pvec = jnp.stack(rows, axis=0)

    args = (x_p, w1, w2, w3, w4, ws, pvec)
    vmem_spec = pl.BlockSpec(memory_space=pltpu.MemorySpace.VMEM)

    out_p = pl.pallas_call(
        _make_kernel(n, n_pad),
        out_shape=jax.ShapeDtypeStruct((n_pad, dout_pad), jnp.float32),
        in_specs=[vmem_spec] * len(args),
        out_specs=vmem_spec,
        compiler_params=pltpu.CompilerParams(
            vmem_limit_bytes=_vmem_budget_bytes(n_pad, din_pad, dout_pad)
        ),
    )(*args)

    return out_p[:n, :dim_out]


def init_params(key, dim_in, dim_out):
    """Deterministic synthetic parameters matching the PyTorch module's shapes."""
    ks = jax.random.split(key, 10)
    scale_in = 1.0 / jnp.sqrt(dim_in)
    scale_out = 1.0 / jnp.sqrt(dim_out)

    def lin(k, din, dout, s):
        kw, kb = jax.random.split(k)
        w = jax.random.uniform(kw, (dout, din), jnp.float32, -s, s)
        b = jax.random.uniform(kb, (dout,), jnp.float32, -s, s)
        return w, b

    w1, b1 = lin(ks[0], dim_in, dim_out, scale_in)
    w2, b2 = lin(ks[1], dim_out, dim_out, scale_out)
    w3, b3 = lin(ks[2], dim_out, dim_out, scale_out)
    w4, b4 = lin(ks[3], dim_out, dim_out, scale_out)
    ws, bs = lin(ks[4], dim_in, dim_out, scale_in)

    g1 = 1.0 + 0.1 * jax.random.normal(ks[5], (dim_out,), jnp.float32)
    g2 = 1.0 + 0.1 * jax.random.normal(ks[6], (dim_out,), jnp.float32)
    g3 = 1.0 + 0.1 * jax.random.normal(ks[7], (dim_out,), jnp.float32)
    gs = 1.0 + 0.1 * jax.random.normal(ks[8], (dim_out,), jnp.float32)
    be1, be2, be3, bes = (0.1 * jax.random.normal(k, (dim_out,), jnp.float32)
                          for k in jax.random.split(ks[9], 4))

    return dict(w1=w1, b1=b1, g1=g1, be1=be1,
                w2=w2, b2=b2, g2=g2, be2=be2,
                w3=w3, b3=b3, g3=g3, be3=be3,
                w4=w4, b4=b4,
                ws=ws, bs=bs, gs=gs, bes=bes)


def reference_f32(x, p):
    """Pure-JAX f32 reference mirroring the PyTorch forward (training-mode BN)."""
    def bn(y, g, b):
        m = jnp.mean(y, axis=0, keepdims=True)
        v = jnp.mean((y - m) ** 2, axis=0, keepdims=True)
        return (y - m) / jnp.sqrt(v + EPS) * g + b

    h = _leaky_relu(bn(x @ p["w1"].T + p["b1"], p["g1"], p["be1"]))
    h = _leaky_relu(bn(h @ p["w2"].T + p["b2"], p["g2"], p["be2"]))
    h = _leaky_relu(bn(h @ p["w3"].T + p["b3"], p["g3"], p["be3"]))
    r = bn(x @ p["ws"].T + p["bs"], p["gs"], p["bes"])
    return _leaky_relu(h @ p["w4"].T + p["b4"] + r)


def reference_bf16(x, p):
    """Reference mirroring the kernel's numerics (bf16 MXU operands, f32 acc,
    pre-BN biases dropped, one-pass variance, folded scale/shift)."""
    def mm(a, w):
        return jnp.dot(a.astype(jnp.bfloat16), w.astype(jnp.bfloat16).T,
                       preferred_element_type=jnp.float32)

    def bn(z, g, b):
        m = jnp.mean(z, axis=0, keepdims=True)
        ex2 = jnp.mean(z * z, axis=0, keepdims=True)
        var = jnp.maximum(ex2 - m * m, 0.0)
        s = g * jax.lax.rsqrt(var + EPS)
        t = b - m * s
        return z * s + t

    h = _leaky_relu(bn(mm(x, p["w1"]), p["g1"], p["be1"]))
    h = _leaky_relu(bn(mm(h, p["w2"]), p["g2"], p["be2"]))
    h = _leaky_relu(bn(mm(h, p["w3"]), p["g3"], p["be3"]))
    r = bn(mm(x, p["ws"]), p["gs"], p["bes"])
    return _leaky_relu(mm(h, p["w4"]) + p["b4"] + r)


if __name__ == "__main__":
    batch, dim_in, dim_out = 8, 32, 32
    key = jax.random.PRNGKey(0)
    kx, kp = jax.random.split(key)
    x = jax.random.normal(kx, (batch, dim_in), jnp.float32)
    params = init_params(kp, dim_in, dim_out)

    out = block_full_resnet(x, params)
    jax.block_until_ready(out)
    assert out.shape == (batch, dim_out)

    # Tight check against a reference with identical numerics (bf16 matmuls).
    ref_b = reference_bf16(x, params)
    assert jnp.allclose(out, ref_b, atol=5e-3, rtol=5e-3), "mismatch vs bf16 reference"

    # Sanity check against the exact f32 PyTorch-mirror reference (bf16 MXU
    # operands introduce ~1e-2-level differences; BN renormalizes most of it).
    ref_f = reference_f32(x, params)
    assert jnp.allclose(out, ref_f, atol=7e-2, rtol=7e-2), "mismatch vs f32 reference"

    print("KERNEL_OK")
</pallas_src>

<mosaic_0001>
module attributes {stable_mosaic.version = 11 : i64} {
  func.func @kernel(%arg0: memref<8x128xbf16, #tpu.memory_space<vmem>>, %arg1: memref<128x128xbf16, #tpu.memory_space<vmem>>, %arg2: memref<128x128xbf16, #tpu.memory_space<vmem>>, %arg3: memref<128x128xbf16, #tpu.memory_space<vmem>>, %arg4: memref<128x128xbf16, #tpu.memory_space<vmem>>, %arg5: memref<128x128xbf16, #tpu.memory_space<vmem>>, %arg6: memref<16x128xf32, #tpu.memory_space<vmem>>, %arg7: memref<8x128xf32, #tpu.memory_space<vmem>>) attributes {dimension_semantics = [], scalar_prefetch = 0 : i64, scratch_operands = 0 : i64, tpu.core_type = #tpu.core_type<tc>} {
    %c0 = arith.constant 0 : index
    %c0_0 = arith.constant 0 : index
    %0 = vector.load %arg0[%c0, %c0_0] : memref<8x128xbf16, #tpu.memory_space<vmem>>, vector<8x128xbf16>
    %c0_1 = arith.constant 0 : index
    %c0_2 = arith.constant 0 : index
    %1 = vector.load %arg1[%c0_1, %c0_2] : memref<128x128xbf16, #tpu.memory_space<vmem>>, vector<128x128xbf16>
    %cst = arith.constant dense<0.000000e+00> : vector<8x128xf32>
    %2 = tpu.matmul %0, %1, %cst {dimension_numbers = #tpu.dot_dimension_numbers<[1], [0], [0], [1], [0, 0, 1, 1], [], []>} : vector<8x128xbf16>, vector<128x128xbf16>, vector<8x128xf32> -> vector<8x128xf32>
    %cst_3 = arith.constant dense<0.000000e+00> : vector<128xf32>
    %3 = vector.multi_reduction <add>, %2, %cst_3 [0] : vector<8x128xf32> to vector<128xf32>
    %4 = vector.shape_cast %3 : vector<128xf32> to vector<1x128xf32>
    %cst_4 = arith.constant 1.250000e-01 : f32
    %5 = vector.broadcast %cst_4 : f32 to vector<1x128xf32>
    %6 = arith.mulf %4, %5 : vector<1x128xf32>
    %7 = arith.mulf %2, %2 : vector<8x128xf32>
    %cst_5 = arith.constant dense<0.000000e+00> : vector<128xf32>
    %8 = vector.multi_reduction <add>, %7, %cst_5 [0] : vector<8x128xf32> to vector<128xf32>
    %9 = vector.shape_cast %8 : vector<128xf32> to vector<1x128xf32>
    %cst_6 = arith.constant 1.250000e-01 : f32
    %10 = vector.broadcast %cst_6 : f32 to vector<1x128xf32>
    %11 = arith.mulf %9, %10 : vector<1x128xf32>
    %12 = arith.mulf %6, %6 : vector<1x128xf32>
    %13 = arith.subf %11, %12 : vector<1x128xf32>
    %cst_7 = arith.constant 0.000000e+00 : f32
    %14 = vector.broadcast %cst_7 : f32 to vector<1x128xf32>
    %15 = arith.maximumf %13, %14 : vector<1x128xf32>
    %c0_8 = arith.constant 0 : index
    %c0_9 = arith.constant 0 : index
    %16 = vector.load %arg6[%c0_8, %c0_9] : memref<16x128xf32, #tpu.memory_space<vmem>>, vector<1x128xf32>
    %cst_10 = arith.constant 9.99999974E-6 : f32
    %17 = vector.broadcast %cst_10 : f32 to vector<1x128xf32>
    %18 = arith.addf %15, %17 : vector<1x128xf32>
    %19 = math.rsqrt %18 : vector<1x128xf32>
    %20 = arith.mulf %16, %19 : vector<1x128xf32>
    %c1 = arith.constant 1 : index
    %c0_11 = arith.constant 0 : index
    %21 = vector.load %arg6[%c1, %c0_11] : memref<16x128xf32, #tpu.memory_space<vmem>>, vector<1x128xf32>
    %22 = arith.mulf %6, %20 : vector<1x128xf32>
    %23 = arith.subf %21, %22 : vector<1x128xf32>
    %24 = vector.broadcast %20 : vector<1x128xf32> to vector<8x128xf32>
    %25 = arith.mulf %2, %24 : vector<8x128xf32>
    %26 = vector.broadcast %23 : vector<1x128xf32> to vector<8x128xf32>
    %27 = arith.addf %25, %26 : vector<8x128xf32>
    %cst_12 = arith.constant 0.000000e+00 : f32
    %28 = vector.broadcast %cst_12 : f32 to vector<8x128xf32>
    %29 = arith.cmpf oge, %27, %28 : vector<8x128xf32>
    %cst_13 = arith.constant 0.00999999977 : f32
    %30 = vector.broadcast %cst_13 : f32 to vector<8x128xf32>
    %31 = arith.mulf %30, %27 : vector<8x128xf32>
    %32 = arith.select %29, %27, %31 : vector<8x128xi1>, vector<8x128xf32>
    %33 = arith.truncf %32 : vector<8x128xf32> to vector<8x128xbf16>
    %c0_14 = arith.constant 0 : index
    %c0_15 = arith.constant 0 : index
    %34 = vector.load %arg2[%c0_14, %c0_15] : memref<128x128xbf16, #tpu.memory_space<vmem>>, vector<128x128xbf16>
    %cst_16 = arith.constant dense<0.000000e+00> : vector<8x128xf32>
    %35 = tpu.matmul %33, %34, %cst_16 {dimension_numbers = #tpu.dot_dimension_numbers<[1], [0], [0], [1], [0, 0, 1, 1], [], []>} : vector<8x128xbf16>, vector<128x128xbf16>, vector<8x128xf32> -> vector<8x128xf32>
    %cst_17 = arith.constant dense<0.000000e+00> : vector<128xf32>
    %36 = vector.multi_reduction <add>, %35, %cst_17 [0] : vector<8x128xf32> to vector<128xf32>
    %37 = vector.shape_cast %36 : vector<128xf32> to vector<1x128xf32>
    %cst_18 = arith.constant 1.250000e-01 : f32
    %38 = vector.broadcast %cst_18 : f32 to vector<1x128xf32>
    %39 = arith.mulf %37, %38 : vector<1x128xf32>
    %40 = arith.mulf %35, %35 : vector<8x128xf32>
    %cst_19 = arith.constant dense<0.000000e+00> : vector<128xf32>
    %41 = vector.multi_reduction <add>, %40, %cst_19 [0] : vector<8x128xf32> to vector<128xf32>
    %42 = vector.shape_cast %41 : vector<128xf32> to vector<1x128xf32>
    %cst_20 = arith.constant 1.250000e-01 : f32
    %43 = vector.broadcast %cst_20 : f32 to vector<1x128xf32>
    %44 = arith.mulf %42, %43 : vector<1x128xf32>
    %45 = arith.mulf %39, %39 : vector<1x128xf32>
    %46 = arith.subf %44, %45 : vector<1x128xf32>
    %cst_21 = arith.constant 0.000000e+00 : f32
    %47 = vector.broadcast %cst_21 : f32 to vector<1x128xf32>
    %48 = arith.maximumf %46, %47 : vector<1x128xf32>
    %c2 = arith.constant 2 : index
    %c0_22 = arith.constant 0 : index
    %49 = vector.load %arg6[%c2, %c0_22] : memref<16x128xf32, #tpu.memory_space<vmem>>, vector<1x128xf32>
    %cst_23 = arith.constant 9.99999974E-6 : f32
    %50 = vector.broadcast %cst_23 : f32 to vector<1x128xf32>
    %51 = arith.addf %48, %50 : vector<1x128xf32>
    %52 = math.rsqrt %51 : vector<1x128xf32>
    %53 = arith.mulf %49, %52 : vector<1x128xf32>
    %c3 = arith.constant 3 : index
    %c0_24 = arith.constant 0 : index
    %54 = vector.load %arg6[%c3, %c0_24] : memref<16x128xf32, #tpu.memory_space<vmem>>, vector<1x128xf32>
    %55 = arith.mulf %39, %53 : vector<1x128xf32>
    %56 = arith.subf %54, %55 : vector<1x128xf32>
    %57 = vector.broadcast %53 : vector<1x128xf32> to vector<8x128xf32>
    %58 = arith.mulf %35, %57 : vector<8x128xf32>
    %59 = vector.broadcast %56 : vector<1x128xf32> to vector<8x128xf32>
    %60 = arith.addf %58, %59 : vector<8x128xf32>
    %cst_25 = arith.constant 0.000000e+00 : f32
    %61 = vector.broadcast %cst_25 : f32 to vector<8x128xf32>
    %62 = arith.cmpf oge, %60, %61 : vector<8x128xf32>
    %cst_26 = arith.constant 0.00999999977 : f32
    %63 = vector.broadcast %cst_26 : f32 to vector<8x128xf32>
    %64 = arith.mulf %63, %60 : vector<8x128xf32>
    %65 = arith.select %62, %60, %64 : vector<8x128xi1>, vector<8x128xf32>
    %66 = arith.truncf %65 : vector<8x128xf32> to vector<8x128xbf16>
    %c0_27 = arith.constant 0 : index
    %c0_28 = arith.constant 0 : index
    %67 = vector.load %arg3[%c0_27, %c0_28] : memref<128x128xbf16, #tpu.memory_space<vmem>>, vector<128x128xbf16>
    %cst_29 = arith.constant dense<0.000000e+00> : vector<8x128xf32>
    %68 = tpu.matmul %66, %67, %cst_29 {dimension_numbers = #tpu.dot_dimension_numbers<[1], [0], [0], [1], [0, 0, 1, 1], [], []>} : vector<8x128xbf16>, vector<128x128xbf16>, vector<8x128xf32> -> vector<8x128xf32>
    %cst_30 = arith.constant dense<0.000000e+00> : vector<128xf32>
    %69 = vector.multi_reduction <add>, %68, %cst_30 [0] : vector<8x128xf32> to vector<128xf32>
    %70 = vector.shape_cast %69 : vector<128xf32> to vector<1x128xf32>
    %cst_31 = arith.constant 1.250000e-01 : f32
    %71 = vector.broadcast %cst_31 : f32 to vector<1x128xf32>
    %72 = arith.mulf %70, %71 : vector<1x128xf32>
    %73 = arith.mulf %68, %68 : vector<8x128xf32>
    %cst_32 = arith.constant dense<0.000000e+00> : vector<128xf32>
    %74 = vector.multi_reduction <add>, %73, %cst_32 [0] : vector<8x128xf32> to vector<128xf32>
    %75 = vector.shape_cast %74 : vector<128xf32> to vector<1x128xf32>
    %cst_33 = arith.constant 1.250000e-01 : f32
    %76 = vector.broadcast %cst_33 : f32 to vector<1x128xf32>
    %77 = arith.mulf %75, %76 : vector<1x128xf32>
    %78 = arith.mulf %72, %72 : vector<1x128xf32>
    %79 = arith.subf %77, %78 : vector<1x128xf32>
    %cst_34 = arith.constant 0.000000e+00 : f32
    %80 = vector.broadcast %cst_34 : f32 to vector<1x128xf32>
    %81 = arith.maximumf %79, %80 : vector<1x128xf32>
    %c4 = arith.constant 4 : index
    %c0_35 = arith.constant 0 : index
    %82 = vector.load %arg6[%c4, %c0_35] : memref<16x128xf32, #tpu.memory_space<vmem>>, vector<1x128xf32>
    %cst_36 = arith.constant 9.99999974E-6 : f32
    %83 = vector.broadcast %cst_36 : f32 to vector<1x128xf32>
    %84 = arith.addf %81, %83 : vector<1x128xf32>
    %85 = math.rsqrt %84 : vector<1x128xf32>
    %86 = arith.mulf %82, %85 : vector<1x128xf32>
    %c5 = arith.constant 5 : index
    %c0_37 = arith.constant 0 : index
    %87 = vector.load %arg6[%c5, %c0_37] : memref<16x128xf32, #tpu.memory_space<vmem>>, vector<1x128xf32>
    %88 = arith.mulf %72, %86 : vector<1x128xf32>
    %89 = arith.subf %87, %88 : vector<1x128xf32>
    %90 = vector.broadcast %86 : vector<1x128xf32> to vector<8x128xf32>
    %91 = arith.mulf %68, %90 : vector<8x128xf32>
    %92 = vector.broadcast %89 : vector<1x128xf32> to vector<8x128xf32>
    %93 = arith.addf %91, %92 : vector<8x128xf32>
    %cst_38 = arith.constant 0.000000e+00 : f32
    %94 = vector.broadcast %cst_38 : f32 to vector<8x128xf32>
    %95 = arith.cmpf oge, %93, %94 : vector<8x128xf32>
    %cst_39 = arith.constant 0.00999999977 : f32
    %96 = vector.broadcast %cst_39 : f32 to vector<8x128xf32>
    %97 = arith.mulf %96, %93 : vector<8x128xf32>
    %98 = arith.select %95, %93, %97 : vector<8x128xi1>, vector<8x128xf32>
    %c0_40 = arith.constant 0 : index
    %c0_41 = arith.constant 0 : index
    %99 = vector.load %arg5[%c0_40, %c0_41] : memref<128x128xbf16, #tpu.memory_space<vmem>>, vector<128x128xbf16>
    %cst_42 = arith.constant dense<0.000000e+00> : vector<8x128xf32>
    %100 = tpu.matmul %0, %99, %cst_42 {dimension_numbers = #tpu.dot_dimension_numbers<[1], [0], [0], [1], [0, 0, 1, 1], [], []>} : vector<8x128xbf16>, vector<128x128xbf16>, vector<8x128xf32> -> vector<8x128xf32>
    %cst_43 = arith.constant dense<0.000000e+00> : vector<128xf32>
    %101 = vector.multi_reduction <add>, %100, %cst_43 [0] : vector<8x128xf32> to vector<128xf32>
    %102 = vector.shape_cast %101 : vector<128xf32> to vector<1x128xf32>
    %cst_44 = arith.constant 1.250000e-01 : f32
    %103 = vector.broadcast %cst_44 : f32 to vector<1x128xf32>
    %104 = arith.mulf %102, %103 : vector<1x128xf32>
    %105 = arith.mulf %100, %100 : vector<8x128xf32>
    %cst_45 = arith.constant dense<0.000000e+00> : vector<128xf32>
    %106 = vector.multi_reduction <add>, %105, %cst_45 [0] : vector<8x128xf32> to vector<128xf32>
    %107 = vector.shape_cast %106 : vector<128xf32> to vector<1x128xf32>
    %cst_46 = arith.constant 1.250000e-01 : f32
    %108 = vector.broadcast %cst_46 : f32 to vector<1x128xf32>
    %109 = arith.mulf %107, %108 : vector<1x128xf32>
    %110 = arith.mulf %104, %104 : vector<1x128xf32>
    %111 = arith.subf %109, %110 : vector<1x128xf32>
    %cst_47 = arith.constant 0.000000e+00 : f32
    %112 = vector.broadcast %cst_47 : f32 to vector<1x128xf32>
    %113 = arith.maximumf %111, %112 : vector<1x128xf32>
    %c6 = arith.constant 6 : index
    %c0_48 = arith.constant 0 : index
    %114 = vector.load %arg6[%c6, %c0_48] : memref<16x128xf32, #tpu.memory_space<vmem>>, vector<1x128xf32>
    %cst_49 = arith.constant 9.99999974E-6 : f32
    %115 = vector.broadcast %cst_49 : f32 to vector<1x128xf32>
    %116 = arith.addf %113, %115 : vector<1x128xf32>
    %117 = math.rsqrt %116 : vector<1x128xf32>
    %118 = arith.mulf %114, %117 : vector<1x128xf32>
    %c7 = arith.constant 7 : index
    %c0_50 = arith.constant 0 : index
    %119 = vector.load %arg6[%c7, %c0_50] : memref<16x128xf32, #tpu.memory_space<vmem>>, vector<1x128xf32>
    %120 = arith.mulf %104, %118 : vector<1x128xf32>
    %121 = arith.subf %119, %120 : vector<1x128xf32>
    %122 = vector.broadcast %118 : vector<1x128xf32> to vector<8x128xf32>
    %123 = arith.mulf %100, %122 : vector<8x128xf32>
    %124 = vector.broadcast %121 : vector<1x128xf32> to vector<8x128xf32>
    %125 = arith.addf %123, %124 : vector<8x128xf32>
    %126 = arith.truncf %98 : vector<8x128xf32> to vector<8x128xbf16>
    %c0_51 = arith.constant 0 : index
    %c0_52 = arith.constant 0 : index
    %127 = vector.load %arg4[%c0_51, %c0_52] : memref<128x128xbf16, #tpu.memory_space<vmem>>, vector<128x128xbf16>
    %cst_53 = arith.constant dense<0.000000e+00> : vector<8x128xf32>
    %128 = tpu.matmul %126, %127, %cst_53 {dimension_numbers = #tpu.dot_dimension_numbers<[1], [0], [0], [1], [0, 0, 1, 1], [], []>} : vector<8x128xbf16>, vector<128x128xbf16>, vector<8x128xf32> -> vector<8x128xf32>
    %c8 = arith.constant 8 : index
    %c0_54 = arith.constant 0 : index
    %129 = vector.load %arg6[%c8, %c0_54] : memref<16x128xf32, #tpu.memory_space<vmem>>, vector<1x128xf32>
    %130 = vector.broadcast %129 : vector<1x128xf32> to vector<8x128xf32>
    %131 = arith.addf %128, %130 : vector<8x128xf32>
    %132 = arith.addf %131, %125 : vector<8x128xf32>
    %cst_55 = arith.constant 0.000000e+00 : f32
    %133 = vector.broadcast %cst_55 : f32 to vector<8x128xf32>
    %134 = arith.cmpf oge, %132, %133 : vector<8x128xf32>
    %cst_56 = arith.constant 0.00999999977 : f32
    %135 = vector.broadcast %cst_56 : f32 to vector<8x128xf32>
    %136 = arith.mulf %135, %132 : vector<8x128xf32>
    %137 = arith.select %134, %132, %136 : vector<8x128xi1>, vector<8x128xf32>
    %c0_57 = arith.constant 0 : index
    %c0_58 = arith.constant 0 : index
    %138 = vector.load %arg7[%c0_57, %c0_58] : memref<8x128xf32, #tpu.memory_space<vmem>>, vector<8x128xf32>
    tpu.vector_store %arg7[%c0_57, %c0_58], %137 {strides = array<i32>} : memref<8x128xf32, #tpu.memory_space<vmem>>, vector<8x128xf32>,
    return
  }
}

</mosaic_0001>

<bundles_post_ra>
// kernel: tpu_custom_call.1
= control target key start
LH: loop header
LB: loop body
LE: loop exit
PB: predicated region body
PF: predicated region fallthrough
CT: control target
= control target key end

     0   :  { %12 = vsyncpa [#allocation3], 0  ;;  %s1229_s0 = inlined_call_operand.hbm [shape: bf16[8,128], index: 0, kind: input, shape index: {}]   ;;  %s1230_s1 = inlined_call_operand.hbm [shape: bf16[128,128], index: 1, kind: input, shape index: {}]   ;;  %s1231_s2 = inlined_call_operand.hbm [shape: bf16[128,128], index: 2, kind: input, shape index: {}]   ;;  %s1232_s3 = inlined_call_operand.hbm [shape: bf16[128,128], index: 3, kind: input, shape index: {}]   ;;  %s1233_s4 = inlined_call_operand.hbm [shape: bf16[128,128], index: 4, kind: input, shape index: {}]   ;;  %s1234_s5 = inlined_call_operand.hbm [shape: bf16[128,128], index: 5, kind: input, shape index: {}]   ;;  %s1235_s6 = inlined_call_operand.hbm [shape: f32[16,128], index: 6, kind: input, shape index: {}]   ;;  %s1236_s7 = inlined_call_operand.hbm [shape: f32[8,128], index: 7, kind: output, shape index: {}]  }
   0x1   :  { %13 = vsyncpa [#allocation6], 0 }
   0x2   :  { %14 = vsyncpa [#allocation9], 0 }
   0x3   :  { %15 = vsyncpa [#allocation12], 0  ;;  %s32_s26 = sshll.u32 %s1230_s1, 4  ;;  %s33_s26 = int_to_ptr.hbm [resolvable:$true] %s32_s26 }
   0x4   :  { %16 = vsyncpa [#allocation4], 0  ;;  %s1134_s27 = smov [#allocation5]   ;;  %s58_s8 = sshll.u32 %s1232_s3, 4  ;;  %s59_s8 = int_to_ptr.hbm [resolvable:$true] %s58_s8 }
   0x5   :  { %s34_s28 = sshll.u32 %s1134_s27, 4  ;;  %s1135_s9 = smov 64   ;;  %s35_s28 = int_to_ptr.vmem [resolvable:$true] %s34_s28 }
   0x6   :  { %s1136_s10 = smov 4   ;;  %s1137_s11 = smov [#allocation8]  }
   0x7   :  { %40 = dma.hbm_to_vmem [thread:$0]  %s33_s26, 1024, %s35_s28, [#allocation6], %s1135_s9, %s1135_s9, %s1136_s10  }
   0x8   :  { %s60_s12 = sshll.u32 %s1137_s11, 4  ;;  %s84_s14 = sshll.u32 %s1234_s5, 4  ;;  %s61_s12 = int_to_ptr.vmem [resolvable:$true] %s60_s12  ;;  %s85_s14 = int_to_ptr.hbm [resolvable:$true] %s84_s14 }
   0x9   :  { %66 = dma.hbm_to_vmem [thread:$0]  %s59_s8, 1024, %s61_s12, [#allocation9], %s1135_s9, %s1135_s9, %s1136_s10  }
   0xa   :  { %s22_s16 = sshll.u32 %s1229_s0, 4  ;;  %s1138_s17 = smov [#allocation11]   ;;  %s23_s16 = int_to_ptr.hbm [resolvable:$true] %s22_s16 }
   0xb   :  { %s86_s18 = sshll.u32 %s1138_s17, 4  ;;  %s1139_s19 = smov [#allocation2]   ;;  %s87_s18 = int_to_ptr.vmem [resolvable:$true] %s86_s18 }
   0xc   :  { %92 = dma.hbm_to_vmem [thread:$0]  %s85_s14, 1024, %s87_s18, [#allocation12], %s1135_s9, %s1135_s9, %s1136_s10  }
   0xd   :  { %s24_s5 = sshll.u32 %s1139_s19, 4  ;;  %s45_s22 = sshll.u32 %s1231_s2, 4  ;;  %s25_s5 = int_to_ptr.vmem [resolvable:$true] %s24_s5  ;;  %s46_s22 = int_to_ptr.hbm [resolvable:$true] %s45_s22 }
   0xe   :  { %27 = dma.hbm_to_vmem [thread:$0]  %s23_s16, 64, %s25_s5, [#allocation3]  }
   0xf   :  { %s71_s0 = sshll.u32 %s1233_s4, 4  ;;  %s1140_s25 = smov [#allocation7]   ;;  %s72_s0 = int_to_ptr.hbm [resolvable:$true] %s71_s0 }
  0x10   :  { %s47_s26 = sshll.u32 %s1140_s25, 4  ;;  %s1141_s27 = smov [#allocation10]   ;;  %s48_s26 = int_to_ptr.vmem [resolvable:$true] %s47_s26 }
  0x11   :  { %53 = dma.hbm_to_vmem [thread:$0]  %s46_s22, 1024, %s48_s26, [#allocation6], %s1135_s9, %s1135_s9, %s1136_s10  }
  0x12   :  { %s73_s28 = sshll.u32 %s1141_s27, 4  ;;  %s97_s2 = sshll.u32 %s1235_s6, 4  ;;  %s74_s28 = int_to_ptr.vmem [resolvable:$true] %s73_s28  ;;  %s98_s2 = int_to_ptr.hbm [resolvable:$true] %s97_s2 }
  0x13   :  { %79 = dma.hbm_to_vmem [thread:$0]  %s72_s0, 1024, %s74_s28, [#allocation9], %s1135_s9, %s1135_s9, %s1136_s10  }
  0x14   :  { %s1142_s4 = smov [#allocation13]   ;;  %s1143_s11 = smov 128  }
  0x15   :  { %s99_s8 = sshll.u32 %s1142_s4, 4  ;;  %s1144_s12 = smov 8   ;;  %s100_s8 = int_to_ptr.vmem [resolvable:$true] %s99_s8 }
  0x16   :  { %105 = dma.hbm_to_vmem [thread:$0]  %s98_s2, 256, %s100_s8, [#allocation12], %s1143_s11, %s1143_s11, %s1144_s12  }
  0x17   :  { %1124 = dma.done.wait [#allocation3], 64  }
  0x18   :  { %1125 = vsyncadd [#allocation3], 4294967232 }
  0x19   :  { %1126 = dma.done.wait [#allocation6], 2048  }
  0x1a   :  { %1127 = vsyncadd [#allocation6], 4294965248 }
  0x1b   :  { %1128 = dma.done.wait [#allocation9], 2048  }
  0x1c   :  { %1129 = vsyncadd [#allocation9], 4294965248 }
  0x1d   :  { %1130 = dma.done.wait [#allocation12], 1280  }
  0x1e   :  { %1131 = vsyncadd [#allocation12], 4294966016  ;;  %v878_v0 = vld [vmem:[#allocation5 + $0x38] sm:$0xff]  ;;  %v877_v1 = vld [vmem:[#allocation5 + $0x30] sm:$0xff]  ;;  %s1145_s6 = smov [#allocation14]   ;;  %s698_s1 = sshll.u32 %s1236_s7, 4  ;;  %s699_s1 = int_to_ptr.hbm [resolvable:$true] %s698_s1 }
  0x1f   :  { %199 = vmatpush.bf16.msra.mxu0 %v878_v0  ;;  %v876_v2 = vld [vmem:[#allocation5 + $0x28] sm:$0xff]  ;;  %v875_v3 = vld [vmem:[#allocation5 + $0x20] sm:$0xff]  ;;  %v874_v4 = vld [vmem:[#allocation5 + $0x18] sm:$0xff]  ;;  %s696_s9 = sshll.u32 %s1145_s6, 4  ;;  %s697_s9 = int_to_ptr.vmem [resolvable:$true] %s696_s9 }
  0x20   :  { %v873_v5 = vld [vmem:[#allocation5 + $0x10] sm:$0xff]  ;;  %v872_v6 = vld [vmem:[#allocation5 + $0x8] sm:$0xff]  ;;  %v871_v7 = vld [vmem:[#allocation5] sm:$0xff] }
  0x21   :  { %v1222_v8 = vld [vmem:[#allocation2] sm:$0xf]  ;;  %v885_v10 = vld [vmem:[#allocation7 + $0x30] sm:$0xff]  ;;  %v884_v11 = vld [vmem:[#allocation7 + $0x28] sm:$0xff] }
  0x22   :  { %v886_v9 = vld [vmem:[#allocation7 + $0x38] sm:$0xff]  ;;  %v883_v17 = vld [vmem:[#allocation7 + $0x20] sm:$0xff]  ;;  %v881_v28 = vld [vmem:[#allocation7 + $0x10] sm:$0xff] }
  0x23   :  { %200 = vmatpush.bf16.msra.mxu0 %v877_v1  ;;  %318 = vmatpush.bf16.msra.mxu1 %v886_v9  ;;  %v882_v22 = vld [vmem:[#allocation7 + $0x18] sm:$0xff]  ;;  %v880_v31 = vld [vmem:[#allocation7 + $0x8] sm:$0xff]  ;;  %v879_v35 = vld [vmem:[#allocation7] sm:$0xff] }
  0x24   :  { %v230_v43 = vld [vmem:[#allocation13] sm:$0x1]  ;;  %v243_v47 = vld [vmem:[#allocation13 + $0x1] sm:$0x1]  ;;  %v894_v57 = vld [vmem:[#allocation8 + $0x38] sm:$0xff] }
  0x25   :  { %437 = vmatpush.bf16.msra.mxu2 %v894_v57  ;;  %v893_v58 = vld [vmem:[#allocation8 + $0x30] sm:$0xff]  ;;  %v892_v59 = vld [vmem:[#allocation8 + $0x28] sm:$0xff]  ;;  %v891_v1 = vld [vmem:[#allocation8 + $0x20] sm:$0xff] }
  0x27   :  { %201 = vmatpush.bf16.msra.mxu0 %v876_v2  ;;  %319 = vmatpush.bf16.msra.mxu1 %v885_v10 }
  0x29   :  { %438 = vmatpush.bf16.msra.mxu2 %v893_v58  ;;  %v907_v58 = vld [vmem:[#allocation10 + $0x20] sm:$0xff] }
  0x2b   :  { %202 = vmatpush.bf16.msra.mxu0 %v875_v3  ;;  %320 = vmatpush.bf16.msra.mxu1 %v884_v11 }
  0x2d   :  { %439 = vmatpush.bf16.msra.mxu2 %v892_v59 }
  0x2f   :  { %203 = vmatpush.bf16.msra.mxu0 %v874_v4  ;;  %321 = vmatpush.bf16.msra.mxu1 %v883_v17 }
  0x31   :  { %440 = vmatpush.bf16.msra.mxu2 %v891_v1 }
  0x33   :  { %204 = vmatpush.bf16.msra.mxu0 %v873_v5  ;;  %322 = vmatpush.bf16.msra.mxu1 %v882_v22 }
  0x37   :  { %205 = vmatpush.bf16.msra.mxu0 %v872_v6  ;;  %323 = vmatpush.bf16.msra.mxu1 %v881_v28  ;;  %v890_v6 = vld [vmem:[#allocation8 + $0x18] sm:$0xff] }
  0x38   :  { %441 = vmatpush.bf16.msra.mxu2 %v890_v6 }
  0x3b   :  { %206 = vmatpush.bf16.msra.mxu0 %v871_v7  ;;  %324 = vmatpush.bf16.msra.mxu1 %v880_v31 }
  0x3e   :  { %207 = vmatmul.bf16.vlgmr.msra.gmra.mxu0 %v1222_v8 }
  0x3f   :  { %325 = vmatpush.bf16.msra.mxu1 %v879_v35 }
  0xbb   :  { %v208_v12 = vpop.f32.mrf.mxu0 }
  0xbc   :  { %v212_v13 = vrot.slane %v208_v12, 4  ;;  %v219_v14 = vmul.f32 %v208_v12, %v208_v12 }
  0xbe   :  { %v213_v15 = vadd.f32 %v212_v13, %v208_v12  ;;  %v220_v16 = vrot.slane %v219_v14, 4  ;;  %v889_v13 = vld [vmem:[#allocation8 + $0x10] sm:$0xff] }
  0xbf   :  { %442 = vmatpush.bf16.msra.mxu2 %v889_v13 }
  0xc0   :  { %v214_v18 = vrot.slane %v213_v15, 2  ;;  %v221_v19 = vadd.f32 %v220_v16, %v219_v14  ;;  %v888_v16 = vld [vmem:[#allocation8 + $0x8] sm:$0xff] }
  0xc2   :  { %v215_v20 = vadd.f32 %v214_v18, %v213_v15  ;;  %v222_v21 = vrot.slane %v221_v19, 2 }
  0xc3   :  { %v210_v23 = vpop.f32.mrf.mxu0  ;;  %443 = vmatpush.bf16.msra.mxu2 %v888_v16 }
  0xc4   :  { %v216_v24 = vrot.slane %v215_v20, 1  ;;  %v223_v25 = vadd.f32 %v222_v21, %v221_v19  ;;  %v902_v23 = vld [vmem:[#allocation11 + $0x38] sm:$0xff] }
  0xc5   :  { %555 = vmatpush.bf16.msra.mxu3 %v902_v23 }
  0xc6   :  { %v217_v26 = vadd.f32 %v216_v24, %v215_v20  ;;  %v224_v27 = vrot.slane %v223_v25, 1  ;;  %v887_v20 = vld [vmem:[#allocation8] sm:$0xff]  ;;  %v901_v24 = vld [vmem:[#allocation11 + $0x30] sm:$0xff] }
  0xc7   :  { %444 = vmatpush.bf16.msra.mxu2 %v887_v20 }
  0xc8   :  { %v218_v29 = vmul.f32 0.125, %v217_v26  ;;  %v225_v30 = vadd.f32 %v224_v27, %v223_v25  ;;  %v900_v27 = vld [vmem:[#allocation11 + $0x28] sm:$0xff] }
  0xc9   :  { %556 = vmatpush.bf16.msra.mxu3 %v901_v24 }
  0xca   :  { %v226_v32 = vmul.f32 0.125, %v225_v30  ;;  %v227_v33 = vmul.f32 %v218_v29, %v218_v29  ;;  %v899_v30 = vld [vmem:[#allocation11 + $0x20] sm:$0xff] }
  0xcc   :  { %v228_v34 = vsub.f32 %v226_v32, %v227_v33  ;;  %v349_v32 = vld [vmem:[#allocation13 + $0x2] sm:$0x1] }
  0xcd   :  { %557 = vmatpush.bf16.msra.mxu3 %v900_v27 }
  0xce   :  { %v229_v36 = vmax.f32 %v228_v34, 0.0  ;;  %v898_v34 = vld [vmem:[#allocation11 + $0x18] sm:$0xff] }
  0xd0   :  { %v231_v37 = vadd.f32 1e-05, %v229_v36 }
  0xd1   :  { %558 = vmatpush.bf16.msra.mxu3 %v899_v30 }
  0xd2   :  { %924 = vrsqrt.f32 %v231_v37  ;;  %vm238_vm1 = vweird.f32 %v231_v37 }
  0xd5   :  { %559 = vmatpush.bf16.msra.mxu3 %v898_v34 }
  0xd8   :  { %v925_v38 = vpop.eup %924 }
  0xd9   :  { %v233_v39 = vmul.f32 %v925_v38, %v231_v37  ;;  %vm239_vm0 = vweird.f32 %v925_v38  ;;  %v362_v37 = vld [vmem:[#allocation13 + $0x3] sm:$0x1] }
  0xda   :  { %vm240_vm2 = vmor %vm238_vm1, %vm239_vm0 }
  0xdb   :  { %v234_v40 = vmul.f32 %v925_v38, %v233_v39 }
  0xdd   :  { %v235_v41 = vmul.f32 0.5, %v234_v40 }
  0xdf   :  { %v236_v42 = vsub.f32 1.5, %v235_v41 }
  0xe1   :  { %v237_v44 = vmul.f32 %v925_v38, %v236_v42  ;;  %v896_v42 = vld [vmem:[#allocation11 + $0x8] sm:$0xff] }
  0xe3   :  { %v241_v45 = vsel %vm240_vm2, %v925_v38, %v237_v44  ;;  %v897_v38 = vld [vmem:[#allocation11 + $0x10] sm:$0xff] }
  0xe4   :  { %v242_v46 = vmul.f32 %v241_v45, %v230_v43  ;;  %560 = vmatpush.bf16.msra.mxu3 %v897_v38 }
  0xe6   :  { %v246_v48 = vperm.slane %v242_v46, 0  ;;  %v244_v49 = vmul.f32 %v242_v46, %v218_v29  ;;  %v895_v46 = vld [vmem:[#allocation11] sm:$0xff] }
  0xe8   :  { %v245_v50 = vsub.f32 %v243_v47, %v244_v49  ;;  %v247_v51 = vmul.f32 %v246_v48, %v208_v12  ;;  %561 = vmatpush.bf16.msra.mxu3 %v896_v42 }
  0xea   :  { %v248_v52 = vperm.slane %v245_v50, 0  ;;  %v910_v50 = vld [vmem:[#allocation10 + $0x38] sm:$0xff] }
  0xeb   :  { %673 = vmatpush.bf16.msrb.mxu0 %v910_v50 }
  0xec   :  { %v249_v53 = vadd.f32 %v248_v52, %v247_v51  ;;  %562 = vmatpush.bf16.msra.mxu3 %v895_v46  ;;  %v909_v51 = vld [vmem:[#allocation10 + $0x30] sm:$0xff]  ;;  %v908_v52 = vld [vmem:[#allocation10 + $0x28] sm:$0xff] }
  0xee   :  { %vm250_vm3 = vcmp.ge.f32.partialorder %v249_v53, 0.0  ;;  %v251_v54 = vmul.f32 0.01, %v249_v53 }
  0xef   :  { %563 = vmatmul.bf16.vlgmr.msra.gmra.mxu3 %v1222_v8  ;;  %674 = vmatpush.bf16.msrb.mxu0 %v909_v51 }
  0xf0   :  { %v252_v55 = vsel %vm250_vm3, %v249_v53, %v251_v54 }
  0xf1   :  { %v253_v56 = vpack.c.bf16 %v252_v55, %v252_v55 }
  0xf3   :  { %326 = vmatmul.bf16.vlgmr.msra.gmra.mxu1 %v253_v56  ;;  %675 = vmatpush.bf16.msrb.mxu0 %v908_v52 }
  0xf7   :  { %676 = vmatpush.bf16.msrb.mxu0 %v907_v58 }
 0x170   :  { %v327_v60 = vpop.f32.mrf.mxu1 }
 0x171   :  { %v331_v61 = vrot.slane %v327_v60, 4  ;;  %v338_v62 = vmul.f32 %v327_v60, %v327_v60 }
 0x173   :  { %v332_v63 = vadd.f32 %v331_v61, %v327_v60  ;;  %v339_v0 = vrot.slane %v338_v62, 4 }
 0x175   :  { %v333_v2 = vrot.slane %v332_v63, 2  ;;  %v340_v3 = vadd.f32 %v339_v0, %v338_v62 }
 0x177   :  { %v334_v4 = vadd.f32 %v333_v2, %v332_v63  ;;  %v341_v5 = vrot.slane %v340_v3, 2  ;;  %v906_v63 = vld [vmem:[#allocation10 + $0x18] sm:$0xff] }
 0x178   :  { %v329_v7 = vpop.f32.mrf.mxu1  ;;  %677 = vmatpush.bf16.msrb.mxu0 %v906_v63 }
 0x179   :  { %v335_v9 = vrot.slane %v334_v4, 1  ;;  %v342_v10 = vadd.f32 %v341_v5, %v340_v3 }
 0x17b   :  { %v336_v11 = vadd.f32 %v335_v9, %v334_v4  ;;  %v343_v12 = vrot.slane %v342_v10, 1  ;;  %v905_v4 = vld [vmem:[#allocation10 + $0x10] sm:$0xff] }
 0x17c   :  { %678 = vmatpush.bf16.msrb.mxu0 %v905_v4 }
 0x17d   :  { %v337_v14 = vmul.f32 0.125, %v336_v11  ;;  %v344_v15 = vadd.f32 %v343_v12, %v342_v10  ;;  %v904_v10 = vld [vmem:[#allocation10 + $0x8] sm:$0xff]  ;;  %v903_v12 = vld [vmem:[#allocation10] sm:$0xff] }
 0x17f   :  { %v345_v17 = vmul.f32 0.125, %v344_v15  ;;  %v346_v18 = vmul.f32 %v337_v14, %v337_v14  ;;  %v564_v15 = vpop.f32.mrf.mxu3 }
 0x180   :  { %679 = vmatpush.bf16.msrb.mxu0 %v904_v10 }
 0x181   :  { %v347_v19 = vsub.f32 %v345_v17, %v346_v18 }
 0x183   :  { %v348_v21 = vmax.f32 %v347_v19, 0.0 }
 0x184   :  { %680 = vmatpush.bf16.msrb.mxu0 %v903_v12 }
 0x185   :  { %v350_v22 = vadd.f32 1e-05, %v348_v21 }
 0x187   :  { %926 = vrsqrt.f32 %v350_v22  ;;  %vm357_vm5 = vweird.f32 %v350_v22  ;;  %v566_v19 = vpop.f32.mrf.mxu3 }
 0x18d   :  { %v927_v25 = vpop.eup %926 }
 0x18e   :  { %v352_v26 = vmul.f32 %v927_v25, %v350_v22  ;;  %vm358_vm4 = vweird.f32 %v927_v25  ;;  %v468_v22 = vld [vmem:[#allocation13 + $0x4] sm:$0x1] }
 0x18f   :  { %vm359_vm6 = vmor %vm357_vm5, %vm358_vm4 }
 0x190   :  { %v353_v28 = vmul.f32 %v927_v25, %v352_v26  ;;  %v481_v26 = vld [vmem:[#allocation13 + $0x5] sm:$0x1] }
 0x192   :  { %v354_v29 = vmul.f32 0.5, %v353_v28 }
 0x194   :  { %v355_v31 = vsub.f32 1.5, %v354_v29 }
 0x196   :  { %v356_v33 = vmul.f32 %v927_v25, %v355_v31 }
 0x198   :  { %v360_v35 = vsel %vm359_vm6, %v927_v25, %v356_v33 }
 0x199   :  { %v361_v36 = vmul.f32 %v360_v35, %v349_v32 }
 0x19b   :  { %v365_v39 = vperm.slane %v361_v36, 0  ;;  %v363_v40 = vmul.f32 %v361_v36, %v337_v14  ;;  %v568_v36 = vrot.slane %v564_v15, 4 }
 0x19d   :  { %v364_v41 = vsub.f32 %v362_v37, %v363_v40  ;;  %v366_v43 = vmul.f32 %v365_v39, %v327_v60  ;;  %v575_v37 = vmul.f32 %v564_v15, %v564_v15  ;;  %v569_v38 = vadd.f32 %v568_v36, %v564_v15 }
 0x19f   :  { %v367_v44 = vperm.slane %v364_v41, 0  ;;  %v576_v39 = vrot.slane %v575_v37, 4  ;;  %v570_v40 = vrot.slane %v569_v38, 2 }
 0x1a1   :  { %v368_v45 = vadd.f32 %v367_v44, %v366_v43  ;;  %v577_v41 = vadd.f32 %v576_v39, %v575_v37  ;;  %v571_v42 = vadd.f32 %v570_v40, %v569_v38 }
 0x1a3   :  { %vm369_vm7 = vcmp.ge.f32.partialorder %v368_v45, 0.0  ;;  %v370_v47 = vmul.f32 0.01, %v368_v45  ;;  %v578_v43 = vrot.slane %v577_v41, 2  ;;  %v572_v44 = vrot.slane %v571_v42, 1 }
 0x1a5   :  { %v371_v48 = vsel %vm369_vm7, %v368_v45, %v370_v47  ;;  %v579_v45 = vadd.f32 %v578_v43, %v577_v41  ;;  %v573_v46 = vadd.f32 %v572_v44, %v571_v42 }
 0x1a6   :  { %v372_v49 = vpack.c.bf16 %v371_v48, %v371_v48 }
 0x1a7   :  { %v580_v47 = vrot.slane %v579_v45, 1  ;;  %v574_v48 = vmul.f32 0.125, %v573_v46 }
 0x1a8   :  { %445 = vmatmul.bf16.vlgmr.msra.gmra.mxu2 %v372_v49 }
 0x1a9   :  { %v581_v49 = vadd.f32 %v580_v47, %v579_v45  ;;  %v583_v51 = vmul.f32 %v574_v48, %v574_v48 }
 0x1ab   :  { %v582_v50 = vmul.f32 0.125, %v581_v49 }
 0x1ad   :  { %v584_v52 = vsub.f32 %v582_v50, %v583_v51 }
 0x22b   :  { %v446_v53 = vpop.f32.mrf.mxu2 }
 0x22c   :  { %v450_v54 = vrot.slane %v446_v53, 4  ;;  %v457_v55 = vmul.f32 %v446_v53, %v446_v53 }
 0x22e   :  { %v451_v56 = vadd.f32 %v450_v54, %v446_v53  ;;  %v458_v57 = vrot.slane %v457_v55, 4 }
 0x230   :  { %v452_v59 = vrot.slane %v451_v56, 2  ;;  %v459_v60 = vadd.f32 %v458_v57, %v457_v55 }
 0x232   :  { %v453_v61 = vadd.f32 %v452_v59, %v451_v56  ;;  %v460_v62 = vrot.slane %v459_v60, 2 }
 0x233   :  { %v448_v0 = vpop.f32.mrf.mxu2 }
 0x234   :  { %v454_v8 = vrot.slane %v453_v61, 1  ;;  %v461_v1 = vadd.f32 %v460_v62, %v459_v60 }
 0x236   :  { %v455_v2 = vadd.f32 %v454_v8, %v453_v61  ;;  %v462_v3 = vrot.slane %v461_v1, 1  ;;  %v586_v61 = vld [vmem:[#allocation13 + $0x6] sm:$0x1]  ;;  %v599_v8 = vld [vmem:[#allocation13 + $0x7] sm:$0x1] }
 0x238   :  { %v456_v5 = vmul.f32 0.125, %v455_v2  ;;  %v463_v6 = vadd.f32 %v462_v3, %v461_v1 }
 0x23a   :  { %v464_v7 = vmul.f32 0.125, %v463_v6  ;;  %v465_v9 = vmul.f32 %v456_v5, %v456_v5 }
 0x23c   :  { %v466_v11 = vsub.f32 %v464_v7, %v465_v9 }
 0x23e   :  { %v467_v13 = vmax.f32 %v466_v11, 0.0 }
 0x240   :  { %v469_v14 = vadd.f32 1e-05, %v467_v13 }
 0x242   :  { %928 = vrsqrt.f32 %v469_v14  ;;  %vm476_vm9 = vweird.f32 %v469_v14 }
 0x248   :  { %v929_v16 = vpop.eup %928 }
 0x249   :  { %v471_v17 = vmul.f32 %v929_v16, %v469_v14  ;;  %vm477_vm8 = vweird.f32 %v929_v16 }
 0x24a   :  { %vm478_vm10 = vmor %vm476_vm9, %vm477_vm8 }
 0x24b   :  { %v472_v18 = vmul.f32 %v929_v16, %v471_v17 }
 0x24d   :  { %v473_v20 = vmul.f32 0.5, %v472_v18 }
 0x24f   :  { %v474_v21 = vsub.f32 1.5, %v473_v20 }
 0x251   :  { %v475_v23 = vmul.f32 %v929_v16, %v474_v21 }
 0x253   :  { %v479_v24 = vsel %vm478_vm10, %v929_v16, %v475_v23 }
 0x254   :  { %v480_v25 = vmul.f32 %v479_v24, %v468_v22 }
 0x256   :  { %v482_v27 = vmul.f32 %v480_v25, %v456_v5  ;;  %v484_v28 = vperm.slane %v480_v25, 0  ;;  %v923_v5 = vld [vmem:[#allocation13 + $0x8] ss:$0 sm:$0xff] }
 0x258   :  { %v483_v29 = vsub.f32 %v481_v26, %v482_v27  ;;  %v485_v30 = vmul.f32 %v484_v28, %v446_v53  ;;  %v585_v53 = vmax.f32 %v584_v52, 0.0 }
 0x25a   :  { %v486_v31 = vperm.slane %v483_v29, 0  ;;  %v587_v54 = vadd.f32 1e-05, %v585_v53 }
 0x25c   :  { %v487_v32 = vadd.f32 %v486_v31, %v485_v30  ;;  %930 = vrsqrt.f32 %v587_v54  ;;  %vm594_vm12 = vweird.f32 %v587_v54 }
 0x25e   :  { %vm488_vm11 = vcmp.ge.f32.partialorder %v487_v32, 0.0  ;;  %v489_v33 = vmul.f32 0.01, %v487_v32 }
 0x260   :  { %v490_v34 = vsel %vm488_vm11, %v487_v32, %v489_v33 }
 0x261   :  { %v606_v35 = vpack.c.bf16 %v490_v34, %v490_v34 }
 0x262   :  { %v931_v55 = vpop.eup %930 }
 0x263   :  { %681 = vmatmul.bf16.vlgmr.msrb.gmra.mxu0 %v606_v35  ;;  %v589_v56 = vmul.f32 %v931_v55, %v587_v54  ;;  %vm595_vm13 = vweird.f32 %v931_v55 }
 0x264   :  { %vm596_vm14 = vmor %vm594_vm12, %vm595_vm13 }
 0x265   :  { %v590_v57 = vmul.f32 %v931_v55, %v589_v56 }
 0x267   :  { %v591_v58 = vmul.f32 0.5, %v590_v57 }
 0x269   :  { %v592_v59 = vsub.f32 1.5, %v591_v58 }
 0x26b   :  { %v593_v60 = vmul.f32 %v931_v55, %v592_v59 }
 0x26d   :  { %v597_v62 = vsel %vm596_vm14, %v931_v55, %v593_v60 }
 0x26e   :  { %v598_v63 = vmul.f32 %v597_v62, %v586_v61 }
 0x270   :  { %v600_v0 = vmul.f32 %v598_v63, %v574_v48  ;;  %v602_v1 = vperm.slane %v598_v63, 0 }
 0x272   :  { %v601_v2 = vsub.f32 %v599_v8, %v600_v0  ;;  %v603_v3 = vmul.f32 %v602_v1, %v564_v15 }
 0x274   :  { %v604_v4 = vperm.slane %v601_v2, 0 }
 0x276   :  { %v605_v7 = vadd.f32 %v604_v4, %v603_v3 }
 0x2e0   :  { %v682_v6 = vpop.f32.mrf.mxu0 }
 0x2e1   :  { %v683_v9 = vadd.f32 %v923_v5, %v682_v6 }
 0x2e3   :  { %v686_v10 = vadd.f32 %v683_v9, %v605_v7 }
 0x2e5   :  { %v688_v11 = vmul.f32 0.01, %v686_v10  ;;  %vm687_vm15 = vcmp.ge.f32.partialorder %v686_v10, 0.0 }
 0x2e7   :  { %v689_v12 = vsel %vm687_vm15, %v686_v10, %v688_v11 }
 0x2e8   :  { %v684_v13 = vpop.f32.mrf.mxu0  ;;  %690 = vst [vmem:[#allocation14] sm:$0xff] %v689_v12 }
 0x2e9   :  { %701 = dma.vmem_to_hbm [thread:$0]  %s697_s9, 128, %s699_s1, [#allocation4]  }
 0x2ea   :  { %1132 = dma.done.wait [#allocation4], 128  }
 0x2eb   :  { %1133 = vsyncadd [#allocation4], 4294967168 }
 0x2ec   :  { %706 = vsyncpa [#allocation3], 1 }
 0x2ed   :  { %707 = vsyncpa [#allocation6], 1 }
 0x2ee   :  { %708 = vsyncpa [#allocation9], 1 }
 0x2ef   :  { %709 = vsyncpa [#allocation12], 1 }
 0x2f0   :  { %710 = vsyncpa [#allocation4], 1 }

</bundles_post_ra>
